<compile_context>
chip_gen: v5e
topology: v5e:2x2
jax: 0.10.0
libtpu: 0.0.40
codegen_flags: <defaults>
</compile_context>

<pallas_src>
import jax
import jax.numpy as jnp
from jax import lax
from jax.experimental import pallas as pl
from jax.experimental.pallas import tpu as pltpu


def _attention_kernel(x_ref, w_ref, o_ref):
    # x_ref: (TB, T, H)   tile of batch rows (native dtype)
    # w_ref: (1, H)       attention projection weight (PyTorch Linear layout)
    # o_ref: (TB, 1, H)   pooled rows (trailing squeeze is a free XLA reshape
    #                     in the wrapper, so the store needs no in-kernel
    #                     relayout)
    tb, t, h = x_ref.shape
    x = x_ref[...]                                              # (TB, T, H)
    wq = jnp.broadcast_to(w_ref[...].reshape(1, 1, h), (tb, 1, h)).astype(x.dtype)

    # Linear(H -> 1) scores on the MXU, flash-style 'bqh,bth->bqt' (q == 1).
    # Bias dropped: softmax over T is shift-invariant.
    s = lax.dot_general(
        wq, x, (((2,), (2,)), ((0,), (0,))),
        preferred_element_type=jnp.float32)                     # (TB, 1, T)

    # Softmax over the sequence axis T (last axis -> lane-dense).
    m = jnp.max(s, axis=-1, keepdims=True)                      # (TB, 1, 1)
    e = jnp.exp(s - m)                                          # (TB, 1, T)
    inv = pl.reciprocal(jnp.sum(e, axis=-1, keepdims=True), approx=True)
    wts = (e * inv).astype(x.dtype)                             # (TB, 1, T)

    # Weighted sum over T on the MXU, flash-style 'bqt,bth->bqh'.
    pooled = lax.dot_general(
        wts, x, (((2,), (1,)), ((0,), (0,))),
        preferred_element_type=jnp.float32)                     # (TB, 1, H)
    o_ref[...] = pooled.astype(o_ref.dtype)


def _vmem_params():
    """(target bytes per input block, vmem_limit_bytes), scaled per chip gen."""
    phys = 64 << 20                      # conservative fallback (v7x-sized)
    try:
        phys = int(pltpu.get_tpu_info().vmem_capacity_bytes)
    except Exception:
        pass
    if phys <= (64 << 20):               # v7x-class: 64 MiB physical VMEM
        return 12 << 20, 48 << 20
    return 16 << 20, 64 << 20            # v5e/v6e-class: 128 MiB physical VMEM


def _choose_tile_b(B, T, H, itemsize, target_bytes):
    """Biggest sublane-aligned batch tile that fits the per-gen VMEM budget,
    while keeping >= 4 grid blocks for large inputs (DMA pipelining + v7x
    megacore sharding of the 'parallel' batch axis)."""
    sub = max(8, 32 // max(1, itemsize))          # 8 f32, 16 bf16, 32 int8/fp8
    per_row = max(1, T * H * itemsize)
    if B <= sub or B * per_row <= (1 << 20):
        return B                                   # tiny input: one full block
    tb = int(target_bytes // per_row)
    tb = min(tb, B // 4)                           # >= 4 blocks for big inputs
    tb = max(sub, (tb // sub) * sub)               # sublane-aligned
    return min(tb, B)
    # TODO(synk): for very long T where even (sub, T, H) overflows VMEM, add a
    # second ("arbitrary") grid axis over T with an online-softmax accumulator
    # instead of shrinking tile_b.


def attention_forward(lstm_output, weight, bias=None, *, tile_b=None):
    """JAX wrapper around the Pallas kernel.

    lstm_output: (B, T, H) or (B, H)
    weight:      (1, H)  (PyTorch nn.Linear(hidden_dim, 1) weight layout)
    bias:        (1,)    accepted for API parity; mathematically a no-op
                         (softmax over T is shift-invariant), so not passed.
    returns:     (B, H)
    """
    del bias  # constant shift before softmax over T cancels out exactly
    if lstm_output.ndim == 2:
        lstm_output = lstm_output[:, None, :]                   # unsqueeze(1)
    B, T, H = lstm_output.shape
    itemsize = jnp.dtype(lstm_output.dtype).itemsize

    target_bytes, vmem_limit = _vmem_params()
    if tile_b is None:
        tile_b = _choose_tile_b(B, T, H, itemsize, target_bytes)
    tile_b = max(1, min(int(tile_b), B))
    num_blocks = pl.cdiv(B, tile_b)        # ragged final block handled by Pallas

    w_row = weight.reshape(1, H).astype(lstm_output.dtype)

    out = pl.pallas_call(
        _attention_kernel,
        # Output kept (B, 1, H): block last-two dims always equal full dims and
        # the store needs no in-kernel relayout; trailing squeeze below is free.
        out_shape=jax.ShapeDtypeStruct((B, 1, H), lstm_output.dtype),
        grid_spec=pltpu.PrefetchScalarGridSpec(
            num_scalar_prefetch=0,
            grid=(num_blocks,),
            in_specs=[
                pl.BlockSpec((tile_b, T, H), lambda b: (b, 0, 0)),  # batch tile
                pl.BlockSpec((1, H), lambda b: (0, 0)),             # weight
            ],
            out_specs=pl.BlockSpec((tile_b, 1, H), lambda b: (b, 0, 0)),
        ),
        compiler_params=pltpu.CompilerParams(
            dimension_semantics=("parallel",),
            vmem_limit_bytes=vmem_limit,
        ),
    )(lstm_output, w_row)

    return out.reshape(B, H)


def _reference(lstm_output, weight, bias):
    if lstm_output.ndim == 2:
        lstm_output = lstm_output[:, None, :]
    scores = jnp.einsum("bth,oh->bto", lstm_output, weight) + bias   # (B, T, 1)
    weights = jax.nn.softmax(scores, axis=1)
    return jnp.sum(weights * lstm_output, axis=1)


if __name__ == "__main__":
    key = jax.random.PRNGKey(0)
    B, T, H = 2, 8, 32

    k_x, k_w, k_b = jax.random.split(key, 3)
    x = jax.random.normal(k_x, (B, T, H), dtype=jnp.float32)

    # Deterministic nn.Linear(hidden_dim, 1)-style init: U(-1/sqrt(H), 1/sqrt(H))
    bound = 1.0 / jnp.sqrt(jnp.float32(H))
    weight = jax.random.uniform(k_w, (1, H), minval=-bound, maxval=bound,
                                dtype=jnp.float32)
    bias = jax.random.uniform(k_b, (1,), minval=-bound, maxval=bound,
                              dtype=jnp.float32)

    # 3-D path (B, T, H)
    out = jax.block_until_ready(attention_forward(x, weight, bias))
    ref = _reference(x, weight, bias)
    assert out.shape == (B, H)
    assert jnp.allclose(out, ref, atol=2e-3, rtol=2e-3), "mismatch (3-D path)"

    # 2-D path (B, H) — exercises unsqueeze(1) (softmax over T=1 -> identity)
    x2 = jax.random.normal(k_x, (B, H), dtype=jnp.float32)
    out2 = jax.block_until_ready(attention_forward(x2, weight, bias))
    ref2 = _reference(x2, weight, bias)
    assert out2.shape == (B, H)
    assert jnp.allclose(out2, ref2, atol=2e-3, rtol=2e-3), "mismatch (2-D path)"

    # Multi-block grid with a ragged final block (no wrapper-side padding).
    B3 = 20
    x3 = jax.random.normal(k_w, (B3, T, H), dtype=jnp.float32)
    out3 = jax.block_until_ready(attention_forward(x3, weight, bias, tile_b=8))
    ref3 = _reference(x3, weight, bias)
    assert out3.shape == (B3, H)
    assert jnp.allclose(out3, ref3, atol=2e-3, rtol=2e-3), "mismatch (ragged path)"

    print("KERNEL_OK")
</pallas_src>

<mosaic_0001>
module attributes {stable_mosaic.version = 11 : i64} {
  func.func @_attention_kernel(%arg0: i32, %arg1: memref<2x8x32xf32, #tpu.memory_space<vmem>>, %arg2: memref<1x32xf32, #tpu.memory_space<vmem>>, %arg3: memref<2x1x32xf32, #tpu.memory_space<vmem>>) attributes {dimension_semantics = [#tpu.dimension_semantics<parallel>], iteration_bounds = array<i64: 1>, scalar_prefetch = 0 : i64, scratch_operands = 0 : i64, tpu.core_type = #tpu.core_type<tc>, window_params = [{transform_indices = @transform_0, window_bounds = array<i64: 2, 8, 32>}, {pipeline_mode = #tpu.pipeline_mode<synchronous>, transform_indices = @transform_1, window_bounds = array<i64: 1, 32>}, {transform_indices = @transform_2, window_bounds = array<i64: 2, 1, 32>}]} {
    %c0 = arith.constant 0 : index
    %c0_0 = arith.constant 0 : index
    %c0_1 = arith.constant 0 : index
    %0 = vector.load %arg1[%c0, %c0_0, %c0_1] : memref<2x8x32xf32, #tpu.memory_space<vmem>>, vector<2x8x32xf32>
    %c0_2 = arith.constant 0 : index
    %c0_3 = arith.constant 0 : index
    %1 = vector.load %arg2[%c0_2, %c0_3] : memref<1x32xf32, #tpu.memory_space<vmem>>, vector<1x32xf32>
    %2 = vector.shape_cast %1 : vector<1x32xf32> to vector<1x1x32xf32>
    %3 = vector.shape_cast %2 : vector<1x1x32xf32> to vector<1x1x32xf32>
    %4 = vector.broadcast %3 : vector<1x1x32xf32> to vector<2x1x32xf32>
    %cst = arith.constant dense<0.000000e+00> : vector<2x1x8xf32>
    %5 = tpu.matmul %4, %0, %cst {dimension_numbers = #tpu.dot_dimension_numbers<[2], [2], [1], [1], [0, 0, 0, 1, 1, 1], [0], [0]>} : vector<2x1x32xf32>, vector<2x8x32xf32>, vector<2x1x8xf32> -> vector<2x1x8xf32>
    %cst_4 = arith.constant dense<0xFF800000> : vector<2x1xf32>
    %6 = vector.multi_reduction <maximumf>, %5, %cst_4 [2] : vector<2x1x8xf32> to vector<2x1xf32>
    %7 = vector.shape_cast %6 : vector<2x1xf32> to vector<2x1x1xf32>
    %8 = vector.broadcast %7 : vector<2x1x1xf32> to vector<2x1x8xf32>
    %9 = arith.subf %5, %8 : vector<2x1x8xf32>
    %10 = math.exp %9 : vector<2x1x8xf32>
    %cst_5 = arith.constant dense<0.000000e+00> : vector<2x1xf32>
    %11 = vector.multi_reduction <add>, %10, %cst_5 [2] : vector<2x1x8xf32> to vector<2x1xf32>
    %12 = vector.shape_cast %11 : vector<2x1xf32> to vector<2x1x1xf32>
    %13 = tpu.reciprocal %12 {approx = true} : vector<2x1x1xf32> -> vector<2x1x1xf32>
    %14 = vector.broadcast %13 : vector<2x1x1xf32> to vector<2x1x8xf32>
    %15 = arith.mulf %10, %14 : vector<2x1x8xf32>
    %cst_6 = arith.constant dense<0.000000e+00> : vector<2x1x32xf32>
    %16 = tpu.matmul %15, %0, %cst_6 {dimension_numbers = #tpu.dot_dimension_numbers<[2], [1], [1], [2], [0, 0, 0, 1, 1, 2], [0], [0]>} : vector<2x1x8xf32>, vector<2x8x32xf32>, vector<2x1x32xf32> -> vector<2x1x32xf32>
    %c0_7 = arith.constant 0 : index
    %c0_8 = arith.constant 0 : index
    %c0_9 = arith.constant 0 : index
    %17 = vector.load %arg3[%c0_7, %c0_8, %c0_9] : memref<2x1x32xf32, #tpu.memory_space<vmem>>, vector<2x1x32xf32>
    tpu.vector_store %arg3[%c0_7, %c0_8, %c0_9], %16 {strides = array<i32>} : memref<2x1x32xf32, #tpu.memory_space<vmem>>, vector<2x1x32xf32>,
    return
  }
  func.func @transform_0(%arg0: i32) -> (i32, i32, i32) {
    %c0_i32 = arith.constant 0 : i32
    %c0_i32_0 = arith.constant 0 : i32
    %c0_i32_1 = arith.constant 0 : i32
    return %arg0, %c0_i32, %c0_i32_0 : i32, i32, i32
  }
  func.func @transform_1(%arg0: i32) -> (i32, i32) {
    %c0_i32 = arith.constant 0 : i32
    %c0_i32_0 = arith.constant 0 : i32
    %c0_i32_1 = arith.constant 0 : i32
    return %c0_i32, %c0_i32_0 : i32, i32
  }
  func.func @transform_2(%arg0: i32) -> (i32, i32, i32) {
    %c0_i32 = arith.constant 0 : i32
    %c0_i32_0 = arith.constant 0 : i32
    %c0_i32_1 = arith.constant 0 : i32
    return %arg0, %c0_i32, %c0_i32_0 : i32, i32, i32
  }
}

</mosaic_0001>

<bundles_post_ra>
// kernel: tpu_custom_call.1
= control target key start
LH: loop header
LB: loop body
LE: loop exit
PB: predicated region body
PF: predicated region fallthrough
CT: control target
= control target key end

     0   :  { %7 = vsyncpa [#allocation3], 0  ;;  %s322_s0 = inlined_call_operand.hbm [shape: f32[2,8,32], index: 0, kind: input, shape index: {}]   ;;  %s323_s1 = inlined_call_operand.hbm [shape: f32[1,32], index: 1, kind: input, shape index: {}]   ;;  %s324_s2 = inlined_call_operand.hbm [shape: f32[2,1,32], index: 2, kind: output, shape index: {}]  }
   0x1   :  { %8 = vsyncpa [#allocation6], 0 }
   0x2   :  { %9 = vsyncpa [#allocation4], 0  ;;  %s14_s11 = sshll.u32 %s322_s0, 4  ;;  %s287_s12 = smov [#allocation2]   ;;  %s15_s11 = int_to_ptr.hbm [resolvable:$true] %s14_s11 }
   0x3   :  { %s16_s13 = sshll.u32 %s287_s12, 4  ;;  %s28_s16 = sshll.u32 %s323_s1, 4  ;;  %s17_s13 = int_to_ptr.vmem [resolvable:$true] %s16_s13  ;;  %s29_s16 = int_to_ptr.hbm [resolvable:$true] %s28_s16 }
   0x4   :  { %s288_s17 = smov 128   ;;  %s289_s18 = smov 8  }
   0x5   :  { %22 = dma.hbm_to_vmem [thread:$0]  %s15_s11, 256, %s17_s13, [#allocation3], %s288_s17, %s288_s17, %s289_s18  }
   0x6   :  { %s290_s19 = smov [#allocation5]  }
   0x7   :  { %s30_s20 = sshll.u32 %s290_s19, 4  ;;  %s31_s20 = int_to_ptr.vmem [resolvable:$true] %s30_s20 }
   0x8   :  { %33 = dma.hbm_to_vmem [thread:$0]  %s29_s16, 16, %s31_s20, [#allocation6]  }
   0x9   :  { %281 = dma.done.wait [#allocation3], 256  }
   0xa   :  { %282 = vsyncadd [#allocation3], 4294967040 }
   0xb   :  { %283 = dma.done.wait [#allocation6], 16  }
   0xc   :  { %284 = vsyncadd [#allocation6], 4294967280  ;;  %vm45_vm0 = vcmask 261120   ;;  %v42_v0 = vld [vmem:[#allocation2] sm:$0xff]  ;;  %v43_v1 = vld [vmem:[#allocation2 + $0x8] sm:$0xff]  ;;  %vm95_vm1 = vcmask 57344  }
   0xd   :  { %188 = vmatpush.xpose.msk.msra.mxu0 %vm45_vm0, %v42_v0  ;;  %v44_v2 = vld [vmem:[#allocation5] sm:$0x1]  ;;  %190 = vmatpush.xpose.msk.msra.mxu1 %vm45_vm0, %v43_v1  ;;  %vm118_vm2 = vcmask 64512   ;;  %vm165_vm3 = vcmask 253952   ;;  %s291_s0 = smov [#allocation7]   ;;  %s174_s23 = sshll.u32 %s324_s2, 4  ;;  %s175_s23 = int_to_ptr.hbm [resolvable:$true] %s174_s23 }
   0xe   :  { %137 = vmatpush.msra.mxu2 %v42_v0  ;;  %160 = vmatpush.msra.mxu3 %v43_v1  ;;  %s172_s1 = sshll.u32 %s291_s0, 4  ;;  %s292_s24 = smov 16   ;;  %s173_s1 = int_to_ptr.vmem [resolvable:$true] %s172_s1 }
   0xf   :  { %s293_s25 = smov 1  }
  0x10   :  { %189 = vmatmul.msk.f32.vlgmr.msra.gmra.mxu0 %vm45_vm0, %v44_v2  ;;  %191 = vmatmul.msk.f32.vlgmr.msra.gmra.mxu1 %vm45_vm0, %v44_v2 }
  0x8d   :  { %v69_v3 = vpop.f32.mrf.mxu0  ;;  %v92_v5 = vpop.f32.mrf.mxu1 }
  0x8e   :  { %v96_v4 = vsel %vm95_vm1, %v69_v3, -inf  ;;  %v99_v6 = vsel %vm95_vm1, %v92_v5, -inf }
  0x8f   :  { %97 = vmax.xlane.f32.xlu0 %v96_v4 }
  0x97   :  { %100 = vmax.xlane.f32.xlu0 %v99_v6 }
 0x102   :  { %v98_v7 = vpop.xlane.xlu0 %97 }
 0x103   :  { %v102_v8 = vsub.f32 %v69_v3, %v98_v7 }
 0x105   :  { %v104_v9 = vmul.f32 1.442695, %v102_v8 }
 0x107   :  { %201 = vpow2.f32 %v104_v9 }
 0x10a   :  { %v101_v10 = vpop.xlane.xlu0 %100 }
 0x10b   :  { %v103_v11 = vsub.f32 %v92_v5, %v101_v10 }
 0x10d   :  { %v202_v12 = vpop.eup %201  ;;  %v106_v13 = vmul.f32 1.442695, %v103_v11 }
 0x10e   :  { %v108_v14 = vsel %vm95_vm1, %v202_v12, 0.0 }
 0x10f   :  { %203 = vpow2.f32 %v106_v13  ;;  %109 = vadd.xlane.f32.xlu1 %v108_v14 }
 0x115   :  { %v204_v15 = vpop.eup %203 }
 0x116   :  { %v111_v16 = vsel %vm95_vm1, %v204_v15, 0.0 }
 0x117   :  { %112 = vadd.xlane.f32.xlu1 %v111_v16 }
 0x182   :  { %v110_v17 = vpop.xlane.xlu1 %109 }
 0x183   :  { %205 = vrcp.f32 %v110_v17 }
 0x189   :  { %v206_v18 = vpop.eup %205 }
 0x18a   :  { %v113_v19 = vpop.xlane.xlu1 %112  ;;  %v116_v20 = vmul.f32 %v206_v18, %v202_v12 }
 0x18b   :  { %207 = vrcp.f32 %v113_v19 }
 0x18c   :  { %192 = vmatmul.msk.f32.vlgmr.msra.gmra.mxu2 %vm118_vm2, %v116_v20 }
 0x191   :  { %v208_v21 = vpop.eup %207 }
 0x192   :  { %v117_v22 = vmul.f32 %v208_v21, %v204_v15 }
 0x194   :  { %193 = vmatmul.msk.f32.vlgmr.msra.gmra.mxu3 %vm118_vm2, %v117_v22 }
 0x20f   :  { %v139_v23 = vpop.f32.mrf.mxu2 }
 0x210   :  { %166 = vst.msk [vmem:[#allocation7] sm:$0x1] %vm165_vm3, %v139_v23 }
 0x217   :  { %v162_v24 = vpop.f32.mrf.mxu3 }
 0x218   :  { %167 = vst.msk [vmem:[#allocation7 + $0x1] sm:$0x1] %vm165_vm3, %v162_v24 }
 0x219   :  { %180 = dma.vmem_to_hbm [thread:$0]  %s173_s1, 32, %s175_s23, [#allocation4], %s292_s24, %s292_s24, %s293_s25  }
 0x21a   :  { %285 = dma.done.wait [#allocation4], 32  }
 0x21b   :  { %286 = vsyncadd [#allocation4], 4294967264 }
 0x21c   :  { %185 = vsyncpa [#allocation3], 1 }
 0x21d   :  { %186 = vsyncpa [#allocation6], 1 }
 0x21e   :  { %187 = vsyncpa [#allocation4], 1 }

</bundles_post_ra>
